<compile_context>
chip_gen: v6e
topology: v6e:2x2x1
jax: 0.10.0
libtpu: 0.0.40
codegen_flags: <defaults>
</compile_context>

<pallas_src>
import functools
import math

import numpy as np
import jax
import jax.numpy as jnp
from jax import lax
from jax.experimental import pallas as pl
from jax.experimental.pallas import tpu as pltpu

BN_EPS = 1e-5


# ----------------------------------------------------------------------------
# In-kernel helpers
# ----------------------------------------------------------------------------
def _shifted_tap(h, d, nb, L, C):
    """Tap view at offset d (= tap - pad): for every batch element, output row l
    holds that element's row l + d, or zeros when l + d falls outside [0, L).
    Built purely from static slices + zero splats (no runtime masks, no iota)."""
    if d == 0:
        return h
    a = abs(d)
    z = jnp.zeros((a, C), jnp.float32)
    pieces = []
    for n in range(nb):
        hn = h[n * L:(n + 1) * L, :] if nb > 1 else h
        if d > 0:
            pieces += [hn[a:, :], z]
        else:
            pieces += [z, hn[:L - a, :]]
    return jnp.concatenate(pieces, axis=0)


# ----------------------------------------------------------------------------
# Fused whole-network Pallas kernel
# ----------------------------------------------------------------------------
def fused_net_kernel(*refs, cfgs, nb, fin_l, fin_c):
    """Whole-network forward for one block of `nb` batch elements.

    Activations are kept as 2-D (nb * length, channels) values: batch-major rows,
    channels on the lane axis.  `cfgs` is a static tuple of per-conv-layer
    configs (K, pad, pool, L_in, L_out, C_in, C_out).

    refs layout: [x, (w, scale, shift) * n_conv, w1, b1, w2, b2, out, scratch]
    """
    n_conv = len(cfgs)
    x_ref = refs[0]
    conv_refs = refs[1:1 + 3 * n_conv]
    w1_ref, b1_ref, w2_ref, b2_ref = refs[1 + 3 * n_conv:5 + 3 * n_conv]
    out_ref = refs[5 + 3 * n_conv]
    scratch = refs[6 + 3 * n_conv]

    h = x_ref[0]                                         # (nb*L0, C0)
    last_img = None                                      # (ymax, pool, Lp) of last conv

    for li, (K, pad, pool, L, L_out, C_in, C_out) in enumerate(cfgs):
        w_ref, scale_ref, shift_ref = conv_refs[3 * li:3 * li + 3]
        M = nb * L                                       # matmul M dim (batch folded)

        # ---- conv: per-tap shifted views built in registers and
        # lane-concatenated into one (M, K*C_in) operand -> single MXU matmul.
        taps = [_shifted_tap(h, t - pad, nb, L, C_in) for t in range(K)]
        cols = taps[0] if K == 1 else jnp.concatenate(taps, axis=1)
        y = jnp.dot(cols, w_ref[...], preferred_element_type=jnp.float32)
        # folded BatchNorm(eval) + conv bias, then ReLU
        y = jnp.maximum(y * scale_ref[...] + shift_ref[...], 0.0)   # (M, C_out)

        # ---- ceil-mode max pool.
        Lp = L_out * pool
        if Lp != L:
            # ragged tail: zero-pad every element to Lp rows (zero is the max
            # identity on post-ReLU values) so the batch stays folded.
            tail = jnp.zeros((Lp - L, C_out), jnp.float32)
            if nb == 1:
                y = jnp.concatenate([y, tail], axis=0)
            else:
                pieces = []
                for n in range(nb):
                    pieces += [y[n * L:(n + 1) * L, :], tail]
                y = jnp.concatenate(pieces, axis=0)
        R = nb * Lp
        # windowed max in registers from statically shifted slices; rows
        # 0, pool, 2*pool, ... of `ymax` hold the pooled values.
        if pool > 1:
            yext = jnp.concatenate(
                [y, jnp.zeros((pool - 1, C_out), jnp.float32)], axis=0)
            ymax = yext[0:R, :]
            for j in range(1, pool):
                ymax = jnp.maximum(ymax, yext[j:j + R, :])
        else:
            ymax = y

        if li == n_conv - 1:
            # The FC flatten gathers its rows straight from this pooled image;
            # no separate pooled-activation store is needed.
            if nb > 1:
                scratch[:R, :C_out] = ymax
            last_img = (ymax, pool, Lp)
        elif pool > 1:
            # single store + single strided read per layer for the downsample
            scratch[:R, :C_out] = ymax
            h = scratch[pl.ds(0, nb * L_out, stride=pool), :C_out]  # (nb*L_out, C_out)
        else:
            h = ymax

    # ---- FC head.  Torch flattens the (N, C, 1, L) conv output channel-major
    # (flat index = c*fin_l + l); that permutation is pre-folded into the w1
    # layout, so sequence position l consumes w1 rows [l*fin_c, (l+1)*fin_c).
    ymax_last, last_pool, last_Lp = last_img
    z = None
    for l in range(fin_l):
        if nb == 1:
            h_l = ymax_last[l * last_pool:l * last_pool + 1, :]      # (1, fin_c)
        else:
            h_l = scratch[pl.ds(l * last_pool, nb, stride=last_Lp), :fin_c]
        dz = jnp.dot(h_l, w1_ref[pl.ds(l * fin_c, fin_c), :],
                     preferred_element_type=jnp.float32)
        z = dz if z is None else z + dz
    z = jnp.maximum(z + b1_ref[...], 0.0)                # Linear 1 + ReLU (+dropout=id)
    o = jnp.dot(z, w2_ref[...], preferred_element_type=jnp.float32) + b2_ref[...]
    o = jnp.maximum(o, 0.0)                              # Linear 2 + ReLU (+dropout=id)
    # o >= 0 after the final ReLU, so the naive sigmoid cannot overflow.
    out_ref[0] = 1.0 / (1.0 + jnp.exp(-o))
    # NOTE: the (nb, n_out) store is lane-sparse (n_out < 128) but it is the
    # single final store of the whole network.


# ----------------------------------------------------------------------------
# Wrapper (pallas_call plumbing)
# ----------------------------------------------------------------------------
def _num_tensorcores():
    """Best-effort TensorCores-per-chip (2 on v7x, 1 on v5e/v6e)."""
    try:
        info = pltpu.get_tpu_info()
        for name in ("num_cores", "num_cores_per_chip", "cores_per_chip",
                     "num_tensorcores", "tensorcores_per_chip", "core_count"):
            v = getattr(info, name, None)
            if v:
                try:
                    return max(1, int(v))
                except (TypeError, ValueError):
                    pass
    except Exception:
        pass
    try:
        dev = jax.devices()[0]
        v = getattr(dev, "num_cores", None)
        if v:
            try:
                return max(1, int(v))
            except (TypeError, ValueError):
                pass
        if "v7" in str(getattr(dev, "device_kind", "")).lower():
            return 2
    except Exception:
        pass
    return 1


def custom_network_forward(x_nchw, conv_params, fc_params, force_grid=None):
    """Forward pass equivalent to CustomNetwork.forward (inference mode)."""
    N, _, C0, L0 = x_nchw.shape

    # Static per-layer configuration (Python ints only).
    cfgs = []
    L, C_in = L0, C0
    for p in conv_params:
        K, ci, co = p["w"].shape
        assert ci == C_in
        # The fused conv assumes 'same' output length: odd kernel width with
        # pad = (K-1)//2 (true for the module defaults).
        assert K % 2 == 1 and p["pad"] == (K - 1) // 2, "odd kernel widths only"
        pool = int(p["pool"])
        L_out = -(-L // pool)
        cfgs.append((K, p["pad"], pool, L, L_out, C_in, co))
        L, C_in = L_out, co
    fin_l, fin_c = L, C_in            # final length / channels feeding the FC head

    # ---- batch blocking ----
    # Multi-core chips (v7x): 2 grid blocks, one per TensorCore ("parallel").
    # Single-core chips (v5e/v6e): grid=1 with the whole batch folded into the
    # matmul M dimension (no per-step grid overhead, weights touched once).
    if force_grid is not None:
        assert N % force_grid == 0
        grid, nb = force_grid, N // force_grid
    elif _num_tensorcores() >= 2 and N >= 2 and N % 2 == 0:
        grid, nb = 2, N // 2
    else:
        grid, nb = 1, N

    # Scratch footprint guard (lane dim pads to 128): keep the per-block scratch
    # well inside VMEM even on v7x (64 MiB physical); split into more blocks if
    # a huge batch would blow it up.
    def _scratch_rows(nb_):
        return max(nb_ * c[4] * c[2] for c in cfgs)      # nb * Lp per layer
    MAX_SCRATCH_BYTES = 4 << 20
    while nb > 1 and nb % 2 == 0 and _scratch_rows(nb) * 128 * 4 > MAX_SCRATCH_BYTES:
        grid, nb = grid * 2, nb // 2

    # Input prep: NCHW (N,1,4,L) -> flattened channels-last rows (N*L, 4),
    # grouped into `grid` batch blocks.  (Only XLA work outside the fused kernel.)
    x2d = jnp.transpose(x_nchw[:, 0, :, :], (0, 2, 1)).reshape(grid, nb * L0, C0)

    operands = [x2d]
    in_specs = [pl.BlockSpec((1, nb * L0, C0), lambda g: (g, 0, 0))]
    for p, (K, pad, pool, Lc, L_out, ci, co) in zip(conv_params, cfgs):
        # Fold BatchNorm (eval) + conv bias into one per-channel scale/shift.
        scale = p["gamma"] / jnp.sqrt(p["var"] + BN_EPS)
        shift = (p["b"] - p["mean"]) * scale + p["beta"]
        operands += [p["w"].reshape(K * ci, co),         # im2col weight layout
                     scale.reshape(1, co), shift.reshape(1, co)]
        in_specs += [pl.BlockSpec((K * ci, co), lambda g: (0, 0)),
                     pl.BlockSpec((1, co), lambda g: (0, 0)),
                     pl.BlockSpec((1, co), lambda g: (0, 0))]

    (w1, b1), (w2, b2) = fc_params
    H, O = w1.shape[1], w2.shape[1]
    # fold torch's channel-major flatten (c*fin_l + l) into the FC1 weight layout
    w1r = w1.reshape(fin_c, fin_l, H).transpose(1, 0, 2).reshape(fin_l * fin_c, H)
    operands += [w1r, b1.reshape(1, H), w2, b2.reshape(1, O)]
    in_specs += [pl.BlockSpec((fin_l * fin_c, H), lambda g: (0, 0)),
                 pl.BlockSpec((1, H), lambda g: (0, 0)),
                 pl.BlockSpec((H, O), lambda g: (0, 0)),
                 pl.BlockSpec((1, O), lambda g: (0, 0))]

    # Small VMEM scratch used only for the pooled-downsample strided reads.
    max_rows = max(_scratch_rows(nb), 8)
    max_cols = max(c[6] for c in cfgs)

    kernel = functools.partial(fused_net_kernel, cfgs=tuple(cfgs), nb=nb,
                               fin_l=fin_l, fin_c=fin_c)
    out = pl.pallas_call(
        kernel,
        out_shape=jax.ShapeDtypeStruct((grid, nb, O), jnp.float32),
        grid=(grid,),
        in_specs=in_specs,
        out_specs=pl.BlockSpec((1, nb, O), lambda g: (g, 0, 0)),
        scratch_shapes=[pltpu.VMEM((max_rows, max_cols), jnp.float32)],
        compiler_params=pltpu.CompilerParams(dimension_semantics=("parallel",)),
    )(*operands)
    return out.reshape(N, O)


# ----------------------------------------------------------------------------
# Pure-JAX reference (lax.conv) to validate the Pallas path
# ----------------------------------------------------------------------------
def reference_forward(x_nchw, conv_params, fc_params):
    N = x_nchw.shape[0]
    h = jnp.transpose(x_nchw, (0, 2, 1, 3))            # (N, 4, 1, L): height -> channels
    for p in conv_params:
        K, C_in, C_out = p["w"].shape
        w_oihw = jnp.transpose(p["w"], (2, 1, 0))[:, :, None, :]    # (C_out, C_in, 1, K)
        h = lax.conv_general_dilated(
            h, w_oihw, window_strides=(1, 1),
            padding=((0, 0), (p["pad"], p["pad"])),
            dimension_numbers=("NCHW", "OIHW", "NCHW"))
        h = h + p["b"][None, :, None, None]
        h = ((h - p["mean"][None, :, None, None])
             / jnp.sqrt(p["var"][None, :, None, None] + BN_EPS)
             * p["gamma"][None, :, None, None] + p["beta"][None, :, None, None])
        h = jnp.maximum(h, 0.0)
        L = h.shape[-1]
        pool = p["pool"]
        L_out = -(-L // pool)
        h = jnp.pad(h, ((0, 0), (0, 0), (0, 0), (0, L_out * pool - L)),
                    constant_values=-jnp.inf)
        h = h.reshape(N, h.shape[1], 1, L_out, pool).max(axis=-1)
    flat = h.reshape(N, -1)
    (w1, b1), (w2, b2) = fc_params
    z = jnp.maximum(flat @ w1 + b1, 0.0)
    z = jnp.maximum(z @ w2 + b2, 0.0)
    return jax.nn.sigmoid(z)


# ----------------------------------------------------------------------------
# Deterministic parameter init (shapes dictated by the module __init__)
# ----------------------------------------------------------------------------
def init_params(key, seq_len, num_channels, kernel_widths, pooling_widths, num_units):
    conv_params = []
    c_ins = [4] + num_channels[:-1]                     # first conv consumes the 4 height rows
    L = seq_len
    for c_in, c_out, k, pool in zip(c_ins, num_channels, kernel_widths, pooling_widths):
        key, k1, k2, k3, k4, k5, k6 = jax.random.split(key, 7)
        conv_params.append(dict(
            w=jax.random.normal(k1, (k, c_in, c_out), jnp.float32) * 0.2,
            b=jax.random.normal(k2, (c_out,), jnp.float32) * 0.1,
            gamma=jax.random.uniform(k3, (c_out,), jnp.float32, 0.8, 1.2),
            beta=jax.random.normal(k4, (c_out,), jnp.float32) * 0.1,
            mean=jax.random.normal(k5, (c_out,), jnp.float32) * 0.1,
            var=jax.random.uniform(k6, (c_out,), jnp.float32, 0.5, 1.5),
            pad=(k - 1) // 2,
            pool=pool,
        ))
        L = math.ceil(L / pool)
    fc_input = 1 * L * num_channels[-1]
    units = [fc_input] + list(num_units)
    assert len(num_units) == 2, "fc head is fused for exactly two Linear layers"
    fc_params = []
    for u_in, u_out in zip(units[:-1], units[1:]):
        key, k1, k2 = jax.random.split(key, 3)
        fc_params.append((
            jax.random.normal(k1, (u_in, u_out), jnp.float32) / np.sqrt(u_in),
            jax.random.normal(k2, (u_out,), jnp.float32) * 0.1,
        ))
    return conv_params, fc_params


if __name__ == "__main__":
    # Small config consistent with CustomNetwork's constructor arguments.
    seq_len = 16
    num_channels = [16, 16, 16]
    kernel_widths = [5, 3, 3]
    pooling_widths = [2, 2, 2]
    num_units = [32, 4]

    key = jax.random.PRNGKey(0)
    key, xkey = jax.random.split(key)
    x = jax.random.normal(xkey, (2, 1, 4, seq_len), jnp.float32)   # NCHW, like PyTorch

    conv_params, fc_params = init_params(
        key, seq_len, num_channels, kernel_widths, pooling_widths, num_units)

    ref = jax.block_until_ready(reference_forward(x, conv_params, fc_params))

    # Default (core-count derived) blocking.
    out = jax.block_until_ready(custom_network_forward(x, conv_params, fc_params))
    np.testing.assert_allclose(np.asarray(out), np.asarray(ref), rtol=1e-4, atol=1e-5)

    # Validate both blocking variants regardless of the chip this runs on:
    # grid=1 (batch folded; v5e/v6e path) and grid=2 (one block per core; v7x path).
    for g in (1, 2):
        out_g = jax.block_until_ready(
            custom_network_forward(x, conv_params, fc_params, force_grid=g))
        np.testing.assert_allclose(np.asarray(out_g), np.asarray(ref),
                                   rtol=1e-4, atol=1e-5)

    print("KERNEL_OK")
</pallas_src>

<mosaic_0001>
module attributes {stable_mosaic.version = 11 : i64} {
  func.func @fused_net_kernel(%arg0: i32, %arg1: memref<1x32x4xf32, #tpu.memory_space<vmem>>, %arg2: memref<20x16xf32, #tpu.memory_space<vmem>>, %arg3: memref<1x16xf32, #tpu.memory_space<vmem>>, %arg4: memref<1x16xf32, #tpu.memory_space<vmem>>, %arg5: memref<48x16xf32, #tpu.memory_space<vmem>>, %arg6: memref<1x16xf32, #tpu.memory_space<vmem>>, %arg7: memref<1x16xf32, #tpu.memory_space<vmem>>, %arg8: memref<48x16xf32, #tpu.memory_space<vmem>>, %arg9: memref<1x16xf32, #tpu.memory_space<vmem>>, %arg10: memref<1x16xf32, #tpu.memory_space<vmem>>, %arg11: memref<32x32xf32, #tpu.memory_space<vmem>>, %arg12: memref<1x32xf32, #tpu.memory_space<vmem>>, %arg13: memref<32x4xf32, #tpu.memory_space<vmem>>, %arg14: memref<1x4xf32, #tpu.memory_space<vmem>>, %arg15: memref<1x2x4xf32, #tpu.memory_space<vmem>>, %arg16: memref<32x16xf32, #tpu.memory_space<vmem>>) attributes {dimension_semantics = [#tpu.dimension_semantics<parallel>], iteration_bounds = array<i64: 1>, scalar_prefetch = 0 : i64, scratch_operands = 1 : i64, tpu.core_type = #tpu.core_type<tc>, window_params = [{transform_indices = @transform_0, window_bounds = array<i64: 1, 32, 4>}, {pipeline_mode = #tpu.pipeline_mode<synchronous>, transform_indices = @transform_1, window_bounds = array<i64: 20, 16>}, {pipeline_mode = #tpu.pipeline_mode<synchronous>, transform_indices = @transform_2, window_bounds = array<i64: 1, 16>}, {pipeline_mode = #tpu.pipeline_mode<synchronous>, transform_indices = @transform_3, window_bounds = array<i64: 1, 16>}, {pipeline_mode = #tpu.pipeline_mode<synchronous>, transform_indices = @transform_4, window_bounds = array<i64: 48, 16>}, {pipeline_mode = #tpu.pipeline_mode<synchronous>, transform_indices = @transform_5, window_bounds = array<i64: 1, 16>}, {pipeline_mode = #tpu.pipeline_mode<synchronous>, transform_indices = @transform_6, window_bounds = array<i64: 1, 16>}, {pipeline_mode = #tpu.pipeline_mode<synchronous>, transform_indices = @transform_7, window_bounds = array<i64: 48, 16>}, {pipeline_mode = #tpu.pipeline_mode<synchronous>, transform_indices = @transform_8, window_bounds = array<i64: 1, 16>}, {pipeline_mode = #tpu.pipeline_mode<synchronous>, transform_indices = @transform_9, window_bounds = array<i64: 1, 16>}, {pipeline_mode = #tpu.pipeline_mode<synchronous>, transform_indices = @transform_10, window_bounds = array<i64: 32, 32>}, {pipeline_mode = #tpu.pipeline_mode<synchronous>, transform_indices = @transform_11, window_bounds = array<i64: 1, 32>}, {pipeline_mode = #tpu.pipeline_mode<synchronous>, transform_indices = @transform_12, window_bounds = array<i64: 32, 4>}, {pipeline_mode = #tpu.pipeline_mode<synchronous>, transform_indices = @transform_13, window_bounds = array<i64: 1, 4>}, {transform_indices = @transform_14, window_bounds = array<i64: 1, 2, 4>}]} {
    %c0 = arith.constant 0 : index
    %c0_0 = arith.constant 0 : index
    %c0_1 = arith.constant 0 : index
    %0 = vector.load %arg1[%c0, %c0_0, %c0_1] : memref<1x32x4xf32, #tpu.memory_space<vmem>>, vector<1x32x4xf32>
    %1 = vector.shape_cast %0 : vector<1x32x4xf32> to vector<32x4xf32>
    %cst = arith.constant 0.000000e+00 : f32
    %2 = vector.broadcast %cst : f32 to vector<2x4xf32>
    %3 = vector.extract_strided_slice %1 {offsets = [0, 0], sizes = [16, 4], strides = [1, 1]} : vector<32x4xf32> to vector<16x4xf32>
    %4 = vector.extract_strided_slice %3 {offsets = [0, 0], sizes = [14, 4], strides = [1, 1]} : vector<16x4xf32> to vector<14x4xf32>
    %5 = vector.extract_strided_slice %1 {offsets = [16, 0], sizes = [16, 4], strides = [1, 1]} : vector<32x4xf32> to vector<16x4xf32>
    %6 = vector.extract_strided_slice %5 {offsets = [0, 0], sizes = [14, 4], strides = [1, 1]} : vector<16x4xf32> to vector<14x4xf32>
    %7 = tpu.concatenate %2, %4, %2, %6 in 0 : vector<2x4xf32>, vector<14x4xf32>, vector<2x4xf32>, vector<14x4xf32> -> vector<32x4xf32>
    %cst_2 = arith.constant 0.000000e+00 : f32
    %8 = vector.broadcast %cst_2 : f32 to vector<1x4xf32>
    %9 = vector.extract_strided_slice %1 {offsets = [0, 0], sizes = [16, 4], strides = [1, 1]} : vector<32x4xf32> to vector<16x4xf32>
    %10 = vector.extract_strided_slice %9 {offsets = [0, 0], sizes = [15, 4], strides = [1, 1]} : vector<16x4xf32> to vector<15x4xf32>
    %11 = vector.extract_strided_slice %1 {offsets = [16, 0], sizes = [16, 4], strides = [1, 1]} : vector<32x4xf32> to vector<16x4xf32>
    %12 = vector.extract_strided_slice %11 {offsets = [0, 0], sizes = [15, 4], strides = [1, 1]} : vector<16x4xf32> to vector<15x4xf32>
    %13 = tpu.concatenate %8, %10, %8, %12 in 0 : vector<1x4xf32>, vector<15x4xf32>, vector<1x4xf32>, vector<15x4xf32> -> vector<32x4xf32>
    %cst_3 = arith.constant 0.000000e+00 : f32
    %14 = vector.broadcast %cst_3 : f32 to vector<1x4xf32>
    %15 = vector.extract_strided_slice %1 {offsets = [0, 0], sizes = [16, 4], strides = [1, 1]} : vector<32x4xf32> to vector<16x4xf32>
    %16 = vector.extract_strided_slice %15 {offsets = [1, 0], sizes = [15, 4], strides = [1, 1]} : vector<16x4xf32> to vector<15x4xf32>
    %17 = vector.extract_strided_slice %1 {offsets = [16, 0], sizes = [16, 4], strides = [1, 1]} : vector<32x4xf32> to vector<16x4xf32>
    %18 = vector.extract_strided_slice %17 {offsets = [1, 0], sizes = [15, 4], strides = [1, 1]} : vector<16x4xf32> to vector<15x4xf32>
    %19 = tpu.concatenate %16, %14, %18, %14 in 0 : vector<15x4xf32>, vector<1x4xf32>, vector<15x4xf32>, vector<1x4xf32> -> vector<32x4xf32>
    %cst_4 = arith.constant 0.000000e+00 : f32
    %20 = vector.broadcast %cst_4 : f32 to vector<2x4xf32>
    %21 = vector.extract_strided_slice %1 {offsets = [0, 0], sizes = [16, 4], strides = [1, 1]} : vector<32x4xf32> to vector<16x4xf32>
    %22 = vector.extract_strided_slice %21 {offsets = [2, 0], sizes = [14, 4], strides = [1, 1]} : vector<16x4xf32> to vector<14x4xf32>
    %23 = vector.extract_strided_slice %1 {offsets = [16, 0], sizes = [16, 4], strides = [1, 1]} : vector<32x4xf32> to vector<16x4xf32>
    %24 = vector.extract_strided_slice %23 {offsets = [2, 0], sizes = [14, 4], strides = [1, 1]} : vector<16x4xf32> to vector<14x4xf32>
    %25 = tpu.concatenate %22, %20, %24, %20 in 0 : vector<14x4xf32>, vector<2x4xf32>, vector<14x4xf32>, vector<2x4xf32> -> vector<32x4xf32>
    %26 = tpu.concatenate %7, %13, %1, %19, %25 in 1 : vector<32x4xf32>, vector<32x4xf32>, vector<32x4xf32>, vector<32x4xf32>, vector<32x4xf32> -> vector<32x20xf32>
    %c0_5 = arith.constant 0 : index
    %c0_6 = arith.constant 0 : index
    %27 = vector.load %arg2[%c0_5, %c0_6] : memref<20x16xf32, #tpu.memory_space<vmem>>, vector<20x16xf32>
    %cst_7 = arith.constant dense<0.000000e+00> : vector<32x16xf32>
    %28 = tpu.matmul %26, %27, %cst_7 {dimension_numbers = #tpu.dot_dimension_numbers<[1], [0], [0], [1], [0, 0, 1, 1], [], []>} : vector<32x20xf32>, vector<20x16xf32>, vector<32x16xf32> -> vector<32x16xf32>
    %c0_8 = arith.constant 0 : index
    %c0_9 = arith.constant 0 : index
    %29 = vector.load %arg3[%c0_8, %c0_9] : memref<1x16xf32, #tpu.memory_space<vmem>>, vector<1x16xf32>
    %30 = vector.broadcast %29 : vector<1x16xf32> to vector<32x16xf32>
    %31 = arith.mulf %28, %30 : vector<32x16xf32>
    %c0_10 = arith.constant 0 : index
    %c0_11 = arith.constant 0 : index
    %32 = vector.load %arg4[%c0_10, %c0_11] : memref<1x16xf32, #tpu.memory_space<vmem>>, vector<1x16xf32>
    %33 = vector.broadcast %32 : vector<1x16xf32> to vector<32x16xf32>
    %34 = arith.addf %31, %33 : vector<32x16xf32>
    %cst_12 = arith.constant 0.000000e+00 : f32
    %35 = vector.broadcast %cst_12 : f32 to vector<32x16xf32>
    %36 = arith.maximumf %34, %35 : vector<32x16xf32>
    %cst_13 = arith.constant 0.000000e+00 : f32
    %37 = vector.broadcast %cst_13 : f32 to vector<1x16xf32>
    %38 = tpu.concatenate %36, %37 in 0 : vector<32x16xf32>, vector<1x16xf32> -> vector<33x16xf32>
    %39 = vector.extract_strided_slice %38 {offsets = [0, 0], sizes = [32, 16], strides = [1, 1]} : vector<33x16xf32> to vector<32x16xf32>
    %40 = vector.extract_strided_slice %38 {offsets = [1, 0], sizes = [32, 16], strides = [1, 1]} : vector<33x16xf32> to vector<32x16xf32>
    %41 = arith.maximumf %39, %40 : vector<32x16xf32>
    %c0_14 = arith.constant 0 : index
    %c0_15 = arith.constant 0 : index
    %42 = vector.load %arg16[%c0_14, %c0_15] : memref<32x16xf32, #tpu.memory_space<vmem>>, vector<32x16xf32>
    tpu.vector_store %arg16[%c0_14, %c0_15], %41 {strides = array<i32>} : memref<32x16xf32, #tpu.memory_space<vmem>>, vector<32x16xf32>,
    %c0_16 = arith.constant 0 : index
    %c0_17 = arith.constant 0 : index
    %43 = tpu.strided_load %arg16[%c0_16, %c0_17] {strides = array<i32: 2, 1>} : memref<32x16xf32, #tpu.memory_space<vmem>>, vector<16x16xf32>
    %cst_18 = arith.constant 0.000000e+00 : f32
    %44 = vector.broadcast %cst_18 : f32 to vector<1x16xf32>
    %45 = vector.extract_strided_slice %43 {offsets = [0, 0], sizes = [8, 16], strides = [1, 1]} : vector<16x16xf32> to vector<8x16xf32>
    %46 = vector.extract_strided_slice %45 {offsets = [0, 0], sizes = [7, 16], strides = [1, 1]} : vector<8x16xf32> to vector<7x16xf32>
    %47 = vector.extract_strided_slice %43 {offsets = [8, 0], sizes = [8, 16], strides = [1, 1]} : vector<16x16xf32> to vector<8x16xf32>
    %48 = vector.extract_strided_slice %47 {offsets = [0, 0], sizes = [7, 16], strides = [1, 1]} : vector<8x16xf32> to vector<7x16xf32>
    %49 = tpu.concatenate %44, %46, %44, %48 in 0 : vector<1x16xf32>, vector<7x16xf32>, vector<1x16xf32>, vector<7x16xf32> -> vector<16x16xf32>
    %cst_19 = arith.constant 0.000000e+00 : f32
    %50 = vector.broadcast %cst_19 : f32 to vector<1x16xf32>
    %51 = vector.extract_strided_slice %43 {offsets = [0, 0], sizes = [8, 16], strides = [1, 1]} : vector<16x16xf32> to vector<8x16xf32>
    %52 = vector.extract_strided_slice %51 {offsets = [1, 0], sizes = [7, 16], strides = [1, 1]} : vector<8x16xf32> to vector<7x16xf32>
    %53 = vector.extract_strided_slice %43 {offsets = [8, 0], sizes = [8, 16], strides = [1, 1]} : vector<16x16xf32> to vector<8x16xf32>
    %54 = vector.extract_strided_slice %53 {offsets = [1, 0], sizes = [7, 16], strides = [1, 1]} : vector<8x16xf32> to vector<7x16xf32>
    %55 = tpu.concatenate %52, %50, %54, %50 in 0 : vector<7x16xf32>, vector<1x16xf32>, vector<7x16xf32>, vector<1x16xf32> -> vector<16x16xf32>
    %56 = tpu.concatenate %49, %43, %55 in 1 : vector<16x16xf32>, vector<16x16xf32>, vector<16x16xf32> -> vector<16x48xf32>
    %c0_20 = arith.constant 0 : index
    %c0_21 = arith.constant 0 : index
    %57 = vector.load %arg5[%c0_20, %c0_21] : memref<48x16xf32, #tpu.memory_space<vmem>>, vector<48x16xf32>
    %cst_22 = arith.constant dense<0.000000e+00> : vector<16x16xf32>
    %58 = tpu.matmul %56, %57, %cst_22 {dimension_numbers = #tpu.dot_dimension_numbers<[1], [0], [0], [1], [0, 0, 1, 1], [], []>} : vector<16x48xf32>, vector<48x16xf32>, vector<16x16xf32> -> vector<16x16xf32>
    %c0_23 = arith.constant 0 : index
    %c0_24 = arith.constant 0 : index
    %59 = vector.load %arg6[%c0_23, %c0_24] : memref<1x16xf32, #tpu.memory_space<vmem>>, vector<1x16xf32>
    %60 = vector.broadcast %59 : vector<1x16xf32> to vector<16x16xf32>
    %61 = arith.mulf %58, %60 : vector<16x16xf32>
    %c0_25 = arith.constant 0 : index
    %c0_26 = arith.constant 0 : index
    %62 = vector.load %arg7[%c0_25, %c0_26] : memref<1x16xf32, #tpu.memory_space<vmem>>, vector<1x16xf32>
    %63 = vector.broadcast %62 : vector<1x16xf32> to vector<16x16xf32>
    %64 = arith.addf %61, %63 : vector<16x16xf32>
    %cst_27 = arith.constant 0.000000e+00 : f32
    %65 = vector.broadcast %cst_27 : f32 to vector<16x16xf32>
    %66 = arith.maximumf %64, %65 : vector<16x16xf32>
    %cst_28 = arith.constant 0.000000e+00 : f32
    %67 = vector.broadcast %cst_28 : f32 to vector<1x16xf32>
    %68 = tpu.concatenate %66, %67 in 0 : vector<16x16xf32>, vector<1x16xf32> -> vector<17x16xf32>
    %69 = vector.extract_strided_slice %68 {offsets = [0, 0], sizes = [16, 16], strides = [1, 1]} : vector<17x16xf32> to vector<16x16xf32>
    %70 = vector.extract_strided_slice %68 {offsets = [1, 0], sizes = [16, 16], strides = [1, 1]} : vector<17x16xf32> to vector<16x16xf32>
    %71 = arith.maximumf %69, %70 : vector<16x16xf32>
    %c0_29 = arith.constant 0 : index
    %c0_30 = arith.constant 0 : index
    %72 = vector.load %arg16[%c0_29, %c0_30] : memref<32x16xf32, #tpu.memory_space<vmem>>, vector<16x16xf32>
    tpu.vector_store %arg16[%c0_29, %c0_30], %71 {strides = array<i32>} : memref<32x16xf32, #tpu.memory_space<vmem>>, vector<16x16xf32>,
    %c0_31 = arith.constant 0 : index
    %c0_32 = arith.constant 0 : index
    %73 = tpu.strided_load %arg16[%c0_31, %c0_32] {strides = array<i32: 2, 1>} : memref<32x16xf32, #tpu.memory_space<vmem>>, vector<8x16xf32>
    %cst_33 = arith.constant 0.000000e+00 : f32
    %74 = vector.broadcast %cst_33 : f32 to vector<1x16xf32>
    %75 = vector.extract_strided_slice %73 {offsets = [0, 0], sizes = [4, 16], strides = [1, 1]} : vector<8x16xf32> to vector<4x16xf32>
    %76 = vector.extract_strided_slice %75 {offsets = [0, 0], sizes = [3, 16], strides = [1, 1]} : vector<4x16xf32> to vector<3x16xf32>
    %77 = vector.extract_strided_slice %73 {offsets = [4, 0], sizes = [4, 16], strides = [1, 1]} : vector<8x16xf32> to vector<4x16xf32>
    %78 = vector.extract_strided_slice %77 {offsets = [0, 0], sizes = [3, 16], strides = [1, 1]} : vector<4x16xf32> to vector<3x16xf32>
    %79 = tpu.concatenate %74, %76, %74, %78 in 0 : vector<1x16xf32>, vector<3x16xf32>, vector<1x16xf32>, vector<3x16xf32> -> vector<8x16xf32>
    %cst_34 = arith.constant 0.000000e+00 : f32
    %80 = vector.broadcast %cst_34 : f32 to vector<1x16xf32>
    %81 = vector.extract_strided_slice %73 {offsets = [0, 0], sizes = [4, 16], strides = [1, 1]} : vector<8x16xf32> to vector<4x16xf32>
    %82 = vector.extract_strided_slice %81 {offsets = [1, 0], sizes = [3, 16], strides = [1, 1]} : vector<4x16xf32> to vector<3x16xf32>
    %83 = vector.extract_strided_slice %73 {offsets = [4, 0], sizes = [4, 16], strides = [1, 1]} : vector<8x16xf32> to vector<4x16xf32>
    %84 = vector.extract_strided_slice %83 {offsets = [1, 0], sizes = [3, 16], strides = [1, 1]} : vector<4x16xf32> to vector<3x16xf32>
    %85 = tpu.concatenate %82, %80, %84, %80 in 0 : vector<3x16xf32>, vector<1x16xf32>, vector<3x16xf32>, vector<1x16xf32> -> vector<8x16xf32>
    %86 = tpu.concatenate %79, %73, %85 in 1 : vector<8x16xf32>, vector<8x16xf32>, vector<8x16xf32> -> vector<8x48xf32>
    %c0_35 = arith.constant 0 : index
    %c0_36 = arith.constant 0 : index
    %87 = vector.load %arg8[%c0_35, %c0_36] : memref<48x16xf32, #tpu.memory_space<vmem>>, vector<48x16xf32>
    %cst_37 = arith.constant dense<0.000000e+00> : vector<8x16xf32>
    %88 = tpu.matmul %86, %87, %cst_37 {dimension_numbers = #tpu.dot_dimension_numbers<[1], [0], [0], [1], [0, 0, 1, 1], [], []>} : vector<8x48xf32>, vector<48x16xf32>, vector<8x16xf32> -> vector<8x16xf32>
    %c0_38 = arith.constant 0 : index
    %c0_39 = arith.constant 0 : index
    %89 = vector.load %arg9[%c0_38, %c0_39] : memref<1x16xf32, #tpu.memory_space<vmem>>, vector<1x16xf32>
    %90 = vector.broadcast %89 : vector<1x16xf32> to vector<8x16xf32>
    %91 = arith.mulf %88, %90 : vector<8x16xf32>
    %c0_40 = arith.constant 0 : index
    %c0_41 = arith.constant 0 : index
    %92 = vector.load %arg10[%c0_40, %c0_41] : memref<1x16xf32, #tpu.memory_space<vmem>>, vector<1x16xf32>
    %93 = vector.broadcast %92 : vector<1x16xf32> to vector<8x16xf32>
    %94 = arith.addf %91, %93 : vector<8x16xf32>
    %cst_42 = arith.constant 0.000000e+00 : f32
    %95 = vector.broadcast %cst_42 : f32 to vector<8x16xf32>
    %96 = arith.maximumf %94, %95 : vector<8x16xf32>
    %cst_43 = arith.constant 0.000000e+00 : f32
    %97 = vector.broadcast %cst_43 : f32 to vector<1x16xf32>
    %98 = tpu.concatenate %96, %97 in 0 : vector<8x16xf32>, vector<1x16xf32> -> vector<9x16xf32>
    %99 = vector.extract_strided_slice %98 {offsets = [0, 0], sizes = [8, 16], strides = [1, 1]} : vector<9x16xf32> to vector<8x16xf32>
    %100 = vector.extract_strided_slice %98 {offsets = [1, 0], sizes = [8, 16], strides = [1, 1]} : vector<9x16xf32> to vector<8x16xf32>
    %101 = arith.maximumf %99, %100 : vector<8x16xf32>
    %c0_44 = arith.constant 0 : index
    %c0_45 = arith.constant 0 : index
    %102 = vector.load %arg16[%c0_44, %c0_45] : memref<32x16xf32, #tpu.memory_space<vmem>>, vector<8x16xf32>
    tpu.vector_store %arg16[%c0_44, %c0_45], %101 {strides = array<i32>} : memref<32x16xf32, #tpu.memory_space<vmem>>, vector<8x16xf32>,
    %c0_46 = arith.constant 0 : index
    %c0_47 = arith.constant 0 : index
    %103 = tpu.strided_load %arg16[%c0_46, %c0_47] {strides = array<i32: 4, 1>} : memref<32x16xf32, #tpu.memory_space<vmem>>, vector<2x16xf32>
    %c0_48 = arith.constant 0 : index
    %c0_49 = arith.constant 0 : index
    %104 = vector.load %arg11[%c0_48, %c0_49] : memref<32x32xf32, #tpu.memory_space<vmem>>, vector<16x32xf32>
    %cst_50 = arith.constant dense<0.000000e+00> : vector<2x32xf32>
    %105 = tpu.matmul %103, %104, %cst_50 {dimension_numbers = #tpu.dot_dimension_numbers<[1], [0], [0], [1], [0, 0, 1, 1], [], []>} : vector<2x16xf32>, vector<16x32xf32>, vector<2x32xf32> -> vector<2x32xf32>
    %c2 = arith.constant 2 : index
    %c0_51 = arith.constant 0 : index
    %106 = tpu.strided_load %arg16[%c2, %c0_51] {strides = array<i32: 4, 1>} : memref<32x16xf32, #tpu.memory_space<vmem>>, vector<2x16xf32>
    %c16 = arith.constant 16 : index
    %c0_52 = arith.constant 0 : index
    %107 = vector.load %arg11[%c16, %c0_52] : memref<32x32xf32, #tpu.memory_space<vmem>>, vector<16x32xf32>
    %cst_53 = arith.constant dense<0.000000e+00> : vector<2x32xf32>
    %108 = tpu.matmul %106, %107, %cst_53 {dimension_numbers = #tpu.dot_dimension_numbers<[1], [0], [0], [1], [0, 0, 1, 1], [], []>} : vector<2x16xf32>, vector<16x32xf32>, vector<2x32xf32> -> vector<2x32xf32>
    %109 = arith.addf %105, %108 : vector<2x32xf32>
    %c0_54 = arith.constant 0 : index
    %c0_55 = arith.constant 0 : index
    %110 = vector.load %arg12[%c0_54, %c0_55] : memref<1x32xf32, #tpu.memory_space<vmem>>, vector<1x32xf32>
    %111 = vector.broadcast %110 : vector<1x32xf32> to vector<2x32xf32>
    %112 = arith.addf %109, %111 : vector<2x32xf32>
    %cst_56 = arith.constant 0.000000e+00 : f32
    %113 = vector.broadcast %cst_56 : f32 to vector<2x32xf32>
    %114 = arith.maximumf %112, %113 : vector<2x32xf32>
    %c0_57 = arith.constant 0 : index
    %c0_58 = arith.constant 0 : index
    %115 = vector.load %arg13[%c0_57, %c0_58] : memref<32x4xf32, #tpu.memory_space<vmem>>, vector<32x4xf32>
    %cst_59 = arith.constant dense<0.000000e+00> : vector<2x4xf32>
    %116 = tpu.matmul %114, %115, %cst_59 {dimension_numbers = #tpu.dot_dimension_numbers<[1], [0], [0], [1], [0, 0, 1, 1], [], []>} : vector<2x32xf32>, vector<32x4xf32>, vector<2x4xf32> -> vector<2x4xf32>
    %c0_60 = arith.constant 0 : index
    %c0_61 = arith.constant 0 : index
    %117 = vector.load %arg14[%c0_60, %c0_61] : memref<1x4xf32, #tpu.memory_space<vmem>>, vector<1x4xf32>
    %118 = vector.broadcast %117 : vector<1x4xf32> to vector<2x4xf32>
    %119 = arith.addf %116, %118 : vector<2x4xf32>
    %cst_62 = arith.constant 0.000000e+00 : f32
    %120 = vector.broadcast %cst_62 : f32 to vector<2x4xf32>
    %121 = arith.maximumf %119, %120 : vector<2x4xf32>
    %cst_63 = arith.constant 0.000000e+00 : f32
    %122 = vector.broadcast %cst_63 : f32 to vector<2x4xf32>
    %123 = arith.subf %122, %121 : vector<2x4xf32>
    %124 = math.exp %123 : vector<2x4xf32>
    %cst_64 = arith.constant 1.000000e+00 : f32
    %125 = vector.broadcast %cst_64 : f32 to vector<2x4xf32>
    %126 = arith.addf %125, %124 : vector<2x4xf32>
    %cst_65 = arith.constant 1.000000e+00 : f32
    %127 = vector.broadcast %cst_65 : f32 to vector<2x4xf32>
    %128 = arith.divf %127, %126 : vector<2x4xf32>
    %c0_66 = arith.constant 0 : index
    %c0_67 = arith.constant 0 : index
    %c0_68 = arith.constant 0 : index
    %129 = vector.load %arg15[%c0_66, %c0_67, %c0_68] : memref<1x2x4xf32, #tpu.memory_space<vmem>>, vector<1x2x4xf32>
    %130 = vector.shape_cast %129 : vector<1x2x4xf32> to vector<2x4xf32>
    %131 = vector.shape_cast %128 : vector<2x4xf32> to vector<1x2x4xf32>
    tpu.vector_store %arg15[%c0_66, %c0_67, %c0_68], %131 {strides = array<i32>} : memref<1x2x4xf32, #tpu.memory_space<vmem>>, vector<1x2x4xf32>,
    return
  }
  func.func @transform_0(%arg0: i32) -> (i32, i32, i32) {
    %c0_i32 = arith.constant 0 : i32
    %c0_i32_0 = arith.constant 0 : i32
    %c0_i32_1 = arith.constant 0 : i32
    return %arg0, %c0_i32, %c0_i32_0 : i32, i32, i32
  }
  func.func @transform_1(%arg0: i32) -> (i32, i32) {
    %c0_i32 = arith.constant 0 : i32
    %c0_i32_0 = arith.constant 0 : i32
    %c0_i32_1 = arith.constant 0 : i32
    return %c0_i32, %c0_i32_0 : i32, i32
  }
  func.func @transform_2(%arg0: i32) -> (i32, i32) {
    %c0_i32 = arith.constant 0 : i32
    %c0_i32_0 = arith.constant 0 : i32
    %c0_i32_1 = arith.constant 0 : i32
    return %c0_i32, %c0_i32_0 : i32, i32
  }
  func.func @transform_3(%arg0: i32) -> (i32, i32) {
    %c0_i32 = arith.constant 0 : i32
    %c0_i32_0 = arith.constant 0 : i32
    %c0_i32_1 = arith.constant 0 : i32
    return %c0_i32, %c0_i32_0 : i32, i32
  }
  func.func @transform_4(%arg0: i32) -> (i32, i32) {
    %c0_i32 = arith.constant 0 : i32
    %c0_i32_0 = arith.constant 0 : i32
    %c0_i32_1 = arith.constant 0 : i32
    return %c0_i32, %c0_i32_0 : i32, i32
  }
  func.func @transform_5(%arg0: i32) -> (i32, i32) {
    %c0_i32 = arith.constant 0 : i32
    %c0_i32_0 = arith.constant 0 : i32
    %c0_i32_1 = arith.constant 0 : i32
    return %c0_i32, %c0_i32_0 : i32, i32
  }
  func.func @transform_6(%arg0: i32) -> (i32, i32) {
    %c0_i32 = arith.constant 0 : i32
    %c0_i32_0 = arith.constant 0 : i32
    %c0_i32_1 = arith.constant 0 : i32
    return %c0_i32, %c0_i32_0 : i32, i32
  }
  func.func @transform_7(%arg0: i32) -> (i32, i32) {
    %c0_i32 = arith.constant 0 : i32
    %c0_i32_0 = arith.constant 0 : i32
    %c0_i32_1 = arith.constant 0 : i32
    return %c0_i32, %c0_i32_0 : i32, i32
  }
  func.func @transform_8(%arg0: i32) -> (i32, i32) {
    %c0_i32 = arith.constant 0 : i32
    %c0_i32_0 = arith.constant 0 : i32
    %c0_i32_1 = arith.constant 0 : i32
    return %c0_i32, %c0_i32_0 : i32, i32
  }
  func.func @transform_9(%arg0: i32) -> (i32, i32) {
    %c0_i32 = arith.constant 0 : i32
    %c0_i32_0 = arith.constant 0 : i32
    %c0_i32_1 = arith.constant 0 : i32
    return %c0_i32, %c0_i32_0 : i32, i32
  }
  func.func @transform_10(%arg0: i32) -> (i32, i32) {
    %c0_i32 = arith.constant 0 : i32
    %c0_i32_0 = arith.constant 0 : i32
    %c0_i32_1 = arith.constant 0 : i32
    return %c0_i32, %c0_i32_0 : i32, i32
  }
  func.func @transform_11(%arg0: i32) -> (i32, i32) {
    %c0_i32 = arith.constant 0 : i32
    %c0_i32_0 = arith.constant 0 : i32
    %c0_i32_1 = arith.constant 0 : i32
    return %c0_i32, %c0_i32_0 : i32, i32
  }
  func.func @transform_12(%arg0: i32) -> (i32, i32) {
    %c0_i32 = arith.constant 0 : i32
    %c0_i32_0 = arith.constant 0 : i32
    %c0_i32_1 = arith.constant 0 : i32
    return %c0_i32, %c0_i32_0 : i32, i32
  }
  func.func @transform_13(%arg0: i32) -> (i32, i32) {
    %c0_i32 = arith.constant 0 : i32
    %c0_i32_0 = arith.constant 0 : i32
    %c0_i32_1 = arith.constant 0 : i32
    return %c0_i32, %c0_i32_0 : i32, i32
  }
  func.func @transform_14(%arg0: i32) -> (i32, i32, i32) {
    %c0_i32 = arith.constant 0 : i32
    %c0_i32_0 = arith.constant 0 : i32
    %c0_i32_1 = arith.constant 0 : i32
    return %arg0, %c0_i32, %c0_i32_0 : i32, i32, i32
  }
}

</mosaic_0001>

<bundles_post_ra>
// kernel: tpu_custom_call.1
= control target key start
LH: loop header
LB: loop body
LE: loop exit
PB: predicated region body
PF: predicated region fallthrough
CT: control target
= control target key end

     0   :  { %vm69_vm0 = vcmask 1040384   ;;  %s1036_s17 = smov 8   ;;  %vm80_vm1 = vcmask 1046528   ;;  %s1037_s20 = smov 4   ;;  %s1367_s0 = inlined_call_operand.vmem [shape: f32[1,32,4], index: 0, kind: input, shape index: {}]   ;;  %s1368_s1 = inlined_call_operand.vmem [shape: f32[20,16], index: 1, kind: input, shape index: {}]   ;;  %s1369_s2 = inlined_call_operand.vmem [shape: f32[1,16], index: 2, kind: input, shape index: {}]   ;;  %s1370_s3 = inlined_call_operand.vmem [shape: f32[1,16], index: 3, kind: input, shape index: {}]   ;;  %s1371_s4 = inlined_call_operand.vmem [shape: f32[48,16], index: 4, kind: input, shape index: {}]   ;;  %s1372_s5 = inlined_call_operand.vmem [shape: f32[1,16], index: 5, kind: input, shape index: {}]   ;;  %s1373_s6 = inlined_call_operand.vmem [shape: f32[1,16], index: 6, kind: input, shape index: {}]   ;;  %s1374_s7 = inlined_call_operand.vmem [shape: f32[48,16], index: 7, kind: input, shape index: {}]   ;;  %s1375_s8 = inlined_call_operand.vmem [shape: f32[1,16], index: 8, kind: input, shape index: {}]   ;;  %s1376_s9 = inlined_call_operand.vmem [shape: f32[1,16], index: 9, kind: input, shape index: {}]   ;;  %s1377_s10 = inlined_call_operand.vmem [shape: f32[32,32], index: 10, kind: input, shape index: {}]   ;;  %s1378_s11 = inlined_call_operand.vmem [shape: f32[1,32], index: 11, kind: input, shape index: {}]   ;;  %s1379_s12 = inlined_call_operand.vmem [shape: f32[32,4], index: 12, kind: input, shape index: {}]   ;;  %s1380_s13 = inlined_call_operand.vmem [shape: f32[1,4], index: 13, kind: input, shape index: {}]   ;;  %s1381_s14 = inlined_call_operand.hbm [shape: f32[1,2,4], index: 14, kind: output, shape index: {}]  }
   0x1   :  { %v1122_v0 = vld [vmem:[%s1367_s0] sm:$0xff]  ;;  %v49_v1 = vld [vmem:[%s1367_s0 + $0x8] sm:$0xff]  ;;  %v1134_v6 = vld [vmem:[%s1367_s0 + $0x10] sm:$0xff] }
   0x2   :  { %116 = vrot.lane.b32.xlu1 %v1122_v0, %s1036_s17  ;;  %v70_v2 = vrot.slane %v1122_v0, 7  ;;  %v71_v3 = vrot.slane %v49_v1, 7  ;;  %v82_v4 = vrot.slane %v49_v1, 1  ;;  %v81_v7 = vrot.slane %v1122_v0, 1 }
   0x4   :  { %v78_v5 = vsel %vm69_vm0, 0.0, %v70_v2 }
   0x5   :  { %104 = vrot.lane.b32.xlu0 %v78_v5, %s1037_s20 }
   0x6   :  { %19 = vsyncpa [#allocation4], 0  ;;  %118 = vrot.lane.b32.xlu1 %v49_v1, %s1036_s17  ;;  %v72_v8 = vsel %vm69_vm0, %v70_v2, %v71_v3  ;;  %v89_v9 = vsel %vm80_vm1, %v82_v4, 0.0  ;;  %v74_v10 = vrot.slane %v1134_v6, 7  ;;  %v92_v11 = vrot.slane %v1122_v0, 2  ;;  %v51_v12 = vld [vmem:[%s1367_s0 + $0x18] sm:$0xff] }
   0x7   :  { %v178_v13 = vld [vmem:[%s1368_s1 + $0x10] sm:$0xf]  ;;  %v83_v14 = vsel %vm80_vm1, %v81_v7, %v82_v4  ;;  %v93_v15 = vrot.slane %v49_v1, 2  ;;  %v55_v16 = vrot.slane %v1122_v0, 6  ;;  %v56_v17 = vrot.slane %v49_v1, 6  ;;  %s1038_s25 = smov 12  }
   0x8   :  { %vm54_vm2 = vcmask 1041408   ;;  %v62_v18 = vrot.slane %v1134_v6, 6  ;;  %vm192_vm3 = vcmask 1043456   ;;  %v63_v19 = vrot.slane %v51_v12, 6  ;;  %v177_v20 = vld [vmem:[%s1368_s1 + $0x8] sm:$0xff]  ;;  %v176_v25 = vld [vmem:[%s1368_s1] sm:$0xff] }
   0x9   :  { %106 = vrot.lane.b32.xlu0 %v72_v8, %s1037_s20  ;;  %v79_v21 = vsel %vm69_vm0, 0.0, %v74_v10  ;;  %vm91_vm4 = vcmask 1045504   ;;  %v75_v22 = vrot.slane %v51_v12, 7  ;;  %v57_v23 = vsel %vm54_vm2, %v55_v16, %v56_v17  ;;  %935 = vmatprep.subr.msk.mxu0 %vm192_vm3, %v178_v13  ;;  %s1039_s29 = smov 16   ;;  %v374_v8 = vld [vmem:[%s1371_s4 + $0x28] sm:$0xff] }
   0xa   :  { %132 = vrot.lane.b32.xlu1 %v89_v9, %s1038_s25  ;;  %936 = vmatpush3.msk.msra.mxu0 %vm192_vm3, %v178_v13  ;;  %v64_v24 = vsel %vm54_vm2, %v62_v18, %v63_v19  ;;  %v94_v26 = vsel %vm91_vm4, %v92_v11, %v93_v15  ;;  %v100_v28 = vsel %vm91_vm4, %v93_v15, 0.0  ;;  %v86_v29 = vrot.slane %v51_v12, 1  ;;  %v373_v9 = vld [vmem:[%s1371_s4 + $0x20] sm:$0xff] }
   0xb   :  { %937 = vmatprep.subr.mxu0 %v177_v20  ;;  %v76_v27 = vsel %vm69_vm0, %v74_v10, %v75_v22  ;;  %v85_v30 = vrot.slane %v1134_v6, 1  ;;  %v97_v32 = vrot.slane %v51_v12, 2  ;;  %v96_v34 = vrot.slane %v1134_v6, 2  ;;  %947 = vmatprep.subr.mxu1 %v374_v8  ;;  %v372_v10 = vld [vmem:[%s1371_s4 + $0x18] sm:$0xff]  ;;  %v888_v11 = vld [vmem:[%s1369_s2] ss:$0 sm:$0xff] }
   0xc   :  { %938 = vmatpush3.msra.mxu0 %v177_v20  ;;  %v90_v31 = vsel %vm80_vm1, %v86_v29, 0.0  ;;  %vm156_vm5 = vcmask 31744   ;;  %v67_v41 = vsel %vm54_vm2, 0.0, %v55_v16  ;;  %vm161_vm6 = vcmask 64512   ;;  %948 = vmatpush3.msra.mxu1 %v374_v8  ;;  %v889_v13 = vld [vmem:[%s1370_s3] ss:$0 sm:$0xff] }
   0xd   :  { %130 = vrot.lane.b32.xlu0 %v83_v14, %s1038_s25  ;;  %939 = vmatprep.subr.mxu0 %v176_v25  ;;  %v87_v33 = vsel %vm80_vm1, %v85_v30, %v86_v29  ;;  %v101_v35 = vsel %vm91_vm4, %v97_v32, 0.0  ;;  %v98_v36 = vsel %vm91_vm4, %v96_v34, %v97_v32  ;;  %vm171_vm7 = vcmask 130048  }
   0xe   :  { %108 = vrot.lane.b32.xlu1 %v79_v21, %s1037_s20  ;;  %940 = vmatpush3.msra.mxu0 %v176_v25  ;;  %vm166_vm8 = vcmask 97280   ;;  %vm179_vm9 = vcmask 162816   ;;  %v68_v59 = vsel %vm54_vm2, 0.0, %v62_v18  ;;  %v1040_v7 = vmov 0.0  }
   0xf   :  { %962 = vmatprep.subr.mxu0 %v1040_v7  ;;  %949 = vmatprep.subr.mxu1 %v373_v9  ;;  %vm366_vm10 = vcmask 261120   ;;  %vm375_vm11 = vcmask 392192   ;;  %vm1042_vm12 = vmmov 0   ;;  %vm499_vm13 = vcmask 1042432  }
  0x10   :  { %950 = vmatpush3.msra.mxu1 %v373_v9  ;;  %vm495_vm14 = vcmask 1044480   ;;  %vm867_vm15 = vcmask 25600  }
  0x11   :  { %144 = vrot.lane.b32.xlu0 %v94_v26, %s1039_s29  ;;  %951 = vmatprep.subr.mxu1 %v372_v10 }
  0x12   :  { %110 = vrot.lane.b32.xlu1 %v76_v27, %s1037_s20  ;;  %952 = vmatpush3.msra.mxu1 %v372_v10 }
  0x15   :  { %146 = vrot.lane.b32.xlu0 %v100_v28, %s1039_s29 }
  0x16   :  { %122 = vrot.lane.b32.xlu1 %v51_v12, %s1036_s17 }
  0x19   :  { %120 = vrot.lane.b32.xlu0 %v1134_v6, %s1036_s17 }
  0x1a   :  { %136 = vrot.lane.b32.xlu1 %v90_v31, %s1038_s25  ;;  %v1231_v31 = vrot.slane %v1040_v7, 1 }
  0x1d   :  { %134 = vrot.lane.b32.xlu0 %v87_v33, %s1038_s25 }
  0x1e   :  { %150 = vrot.lane.b32.xlu1 %v101_v35, %s1039_s29  ;;  %v371_v35 = vld [vmem:[%s1371_s4 + $0x10] sm:$0xff] }
  0x1f   :  { %953 = vmatprep.subr.mxu1 %v371_v35 }
  0x20   :  { %954 = vmatpush3.msra.mxu1 %v371_v35 }
  0x21   :  { %148 = vrot.lane.b32.xlu0 %v98_v36, %s1039_s29 }
  0x74   :  { %v117_v37 = vpop.permute.xlu1 %116 }
  0x77   :  { %v105_v38 = vpop.permute.xlu0 %104 }
  0x78   :  { %v119_v39 = vpop.permute.xlu1 %118  ;;  %v157_v43 = vsel %vm156_vm5, %v67_v41, %v105_v38  ;;  %v370_v38 = vld [vmem:[%s1371_s4 + $0x8] sm:$0xff] }
  0x79   :  { %v162_v47 = vsel %vm161_vm6, %v157_v43, %v117_v37  ;;  %955 = vmatprep.subr.mxu1 %v370_v38 }
  0x7a   :  { %956 = vmatpush3.msra.mxu1 %v370_v38  ;;  %v895_v38 = vld [vmem:[%s1375_s8] ss:$0 sm:$0xff] }
  0x7b   :  { %v107_v40 = vpop.permute.xlu0 %106 }
  0x7c   :  { %v133_v42 = vpop.permute.xlu1 %132  ;;  %v158_v46 = vsel %vm156_vm5, %v57_v23, %v107_v40 }
  0x7d   :  { %v163_v50 = vsel %vm161_vm6, %v158_v46, %v119_v39 }
  0x7e   :  { %v168_v53 = vsel %vm166_vm8, %v163_v50, %v133_v42 }
  0x7f   :  { %v131_v44 = vpop.permute.xlu0 %130 }
  0x80   :  { %v109_v45 = vpop.permute.xlu1 %108  ;;  %v167_v48 = vsel %vm166_vm8, %v162_v47, %v131_v44  ;;  %v369_v44 = vld [vmem:[%s1371_s4] sm:$0xff]  ;;  %s1041_s4 = smov 32  }
  0x81   :  { %v159_v62 = vsel %vm156_vm5, %v68_v59, %v109_v45  ;;  %957 = vmatprep.subr.mxu1 %v369_v44 }
  0x82   :  { %958 = vmatpush3.msra.mxu1 %v369_v44 }
  0x83   :  { %v145_v49 = vpop.permute.xlu0 %144  ;;  %977 = vmatprep.subr.mxu1 %v1040_v7 }
  0x84   :  { %v111_v51 = vpop.permute.xlu1 %110  ;;  %v172_v52 = vsel %vm171_vm7, %v167_v48, %v145_v49 }
  0x85   :  { %941 = vmatprep.mubr.msk.f32.mxu0 %vm179_vm9, %v172_v52  ;;  %v160_v61 = vsel %vm156_vm5, %v64_v24, %v111_v51 }
  0x87   :  { %v147_v54 = vpop.permute.xlu0 %146 }
  0x88   :  { %v173_v55 = vsel %vm171_vm7, %v168_v53, %v147_v54  ;;  %v123_v56 = vpop.permute.xlu1 %122 }
  0x89   :  { %942 = vmatmul.mubr.msk.f32.vlgmr.msra.gmra.mxu0 %vm179_vm9, %v173_v55  ;;  %v165_v1 = vsel %vm161_vm6, %v160_v61, %v123_v56 }
  0x8b   :  { %v121_v57 = vpop.permute.xlu0 %120 }
  0x8c   :  { %v137_v58 = vpop.permute.xlu1 %136  ;;  %v164_v63 = vsel %vm161_vm6, %v159_v62, %v121_v57 }
  0x8d   :  { %v170_v4 = vsel %vm166_vm8, %v165_v1, %v137_v58  ;;  %v515_v1 = vld [vmem:[%s1374_s7 + $0x18] sm:$0xff] }
  0x8f   :  { %v135_v60 = vpop.permute.xlu0 %134 }
  0x90   :  { %v151_v0 = vpop.permute.xlu1 %150  ;;  %v169_v2 = vsel %vm166_vm8, %v164_v63, %v135_v60  ;;  %v517_v63 = vld [vmem:[%s1374_s7 + $0x28] sm:$0xff] }
  0x91   :  { %v175_v6 = vsel %vm171_vm7, %v170_v4, %v151_v0  ;;  %v516_v0 = vld [vmem:[%s1374_s7 + $0x20] sm:$0xff]  ;;  %963 = vmatpush3.msra.mxu0 %v517_v63 }
  0x92   :  { %964 = vmatprep.subr.mxu0 %v1040_v7  ;;  %v893_v4 = vld [vmem:[%s1373_s6] ss:$0 sm:$0xff] }
  0x93   :  { %v149_v3 = vpop.permute.xlu0 %148  ;;  %965 = vmatpush3.msra.mxu0 %v516_v0 }
  0x94   :  { %v174_v5 = vsel %vm171_vm7, %v169_v2, %v149_v3  ;;  %966 = vmatprep.subr.mxu0 %v1040_v7  ;;  %v892_v2 = vld [vmem:[%s1372_s5] ss:$0 sm:$0xff] }
  0x95   :  { %944 = vmatprep.mubr.msk.f32.mxu0 %vm179_vm9, %v174_v5  ;;  %967 = vmatpush3.msra.mxu0 %v515_v1 }
  0x96   :  { %945 = vmatmul.mubr.msk.f32.gmra.mxu0 %vm179_vm9, %v175_v6  ;;  %968 = vmatprep.subr.mxu0 %v1040_v7 }
  0x97   :  { %974 = vmatprep.mubr.msk.f32.mxu0 %vm1042_vm12, %v1040_v7 }
 0x149   :  { %v943_v12 = vpop.f32.mrf.mxu0 }
 0x14a   :  { %v289_v14 = vmul.f32 %v943_v12, %v888_v11 }
 0x14b   :  { %v262_v15 = vpop.f32.mrf.mxu0 }
 0x14c   :  { %v300_v16 = vadd.f32 %v889_v13, %v289_v14  ;;  %v288_v17 = vmul.f32 %v888_v11, %v262_v15 }
 0x14e   :  { %v304_v18 = vmax.f32 %v300_v16, 0.0  ;;  %v299_v19 = vadd.f32 %v889_v13, %v288_v17  ;;  %v514_v16 = vld [vmem:[%s1374_s7 + $0x10] sm:$0xff]  ;;  %v513_v17 = vld [vmem:[%s1374_s7 + $0x8] sm:$0xff] }
 0x14f   :  { %969 = vmatpush3.msra.mxu0 %v514_v16 }
 0x150   :  { %v303_v20 = vmax.f32 %v299_v19, 0.0  ;;  %v313_v21 = vrot.slane %v304_v18, 1  ;;  %970 = vmatprep.subr.mxu0 %v1040_v7 }
 0x151   :  { %971 = vmatpush3.msra.mxu0 %v513_v17 }
 0x152   :  { %v312_v22 = vrot.slane %v303_v20, 1  ;;  %972 = vmatprep.subr.mxu0 %v1040_v7 }
 0x154   :  { %v314_v23 = vsel %vm80_vm1, %v312_v22, %v313_v21 }
 0x155   :  { %v325_v24 = vmax.f32 %v303_v20, %v314_v23 }
 0x156   :  { %v946_v25 = vpop.f32.mrf.mxu0 }
 0x157   :  { %329 = vst.msk [vmem:[#allocation2] sm:$0xff] %vm171_vm7, %v325_v24  ;;  %v291_v26 = vmul.f32 %v946_v25, %v888_v11 }
 0x158   :  { %v272_v27 = vpop.f32.mrf.mxu0 }
 0x159   :  { %v302_v28 = vadd.f32 %v889_v13, %v291_v26  ;;  %v290_v29 = vmul.f32 %v888_v11, %v272_v27 }
 0x15b   :  { %v306_v30 = vmax.f32 %v302_v28, 0.0  ;;  %v301_v32 = vadd.f32 %v889_v13, %v290_v29 }
 0x15d   :  { %v317_v33 = vrot.slane %v306_v30, 1  ;;  %v305_v34 = vmax.f32 %v301_v32, 0.0 }
 0x15f   :  { %v320_v36 = vsel %vm80_vm1, %v317_v33, %v1231_v31  ;;  %v315_v37 = vrot.slane %v305_v34, 1 }
 0x160   :  { %v328_v39 = vmax.f32 %v306_v30, %v320_v36  ;;  %v620_v36 = vld [vmem:[%s1377_s10 + $0x18] sm:$0xff] }
 0x161   :  { %v316_v40 = vsel %vm80_vm1, %v313_v21, %v315_v37  ;;  %v318_v41 = vsel %vm80_vm1, %v315_v37, %v317_v33  ;;  %v512_v21 = vld [vmem:[%s1374_s7] sm:$0xff]  ;;  %v619_v37 = vld [vmem:[%s1377_s10 + $0x10] sm:$0xff] }
 0x162   :  { %332 = vst.msk [vmem:[#allocation2 + $0x18] sm:$0xff] %vm171_vm7, %v328_v39  ;;  %v326_v42 = vmax.f32 %v304_v18, %v316_v40  ;;  %v327_v43 = vmax.f32 %v305_v34, %v318_v41  ;;  %973 = vmatpush3.msra.mxu0 %v512_v21  ;;  %v896_v40 = vld [vmem:[%s1376_s9] ss:$0 sm:$0xff] }
 0x163   :  { %991 = vmatprep.subr.mxu0 %v1040_v7 }
 0x164   :  { %330 = vst.msk [vmem:[#allocation2 + $0x8] sm:$0xff] %vm171_vm7, %v326_v42  ;;  %331 = vst.msk [vmem:[#allocation2 + $0x10] sm:$0xff] %vm171_vm7, %v327_v43 }
 0x16b   :  { %v335_v45 = vld [vmem:[#allocation2 + $0x10] ss:$2 sm:$0xff]  ;;  %v333_v46 = vld [vmem:[#allocation2] ss:$2 sm:$0xff] }
 0x16c   :  { %352 = vrot.lane.b32.xlu1 %v335_v45, %s1039_s29  ;;  %350 = vrot.lane.b32.xlu0 %v333_v46, %s1039_s29  ;;  %v346_v47 = vrot.slane %v335_v45, 1  ;;  %v344_v48 = vrot.slane %v333_v46, 1  ;;  %v340_v51 = vrot.slane %v335_v45, 7  ;;  %v337_v52 = vrot.slane %v333_v46, 7 }
 0x16e   :  { %v349_v49 = vsel %vm80_vm1, %v346_v47, 0.0  ;;  %v348_v50 = vsel %vm80_vm1, %v344_v48, 0.0  ;;  %v343_v55 = vsel %vm69_vm0, 0.0, %v340_v51  ;;  %v342_v56 = vsel %vm69_vm0, 0.0, %v337_v52  ;;  %v616_v48 = vld [vmem:[%s1377_s10 + $0x8] sm:$0xff]  ;;  %v779_v51 = vld [vmem:[%s1379_s12 + $0x18] sm:$0xff] }
 0x16f   :  { %v778_v52 = vld [vmem:[%s1379_s12 + $0x10] sm:$0xff] }
 0x170   :  { %360 = vrot.lane.b32.xlu1 %v349_v49, %s1041_s4  ;;  %358 = vrot.lane.b32.xlu0 %v348_v50, %s1041_s4  ;;  %v615_v50 = vld [vmem:[%s1377_s10] sm:$0xff] }
 0x1de   :  { %v353_v53 = vpop.permute.xlu1 %352  ;;  %v351_v54 = vpop.permute.xlu0 %350 }
 0x1df   :  { %v365_v57 = vsel %vm171_vm7, %v343_v55, %v353_v53  ;;  %v364_v58 = vsel %vm171_vm7, %v342_v56, %v351_v54  ;;  %v777_v53 = vld [vmem:[%s1379_s12 + $0x8] sm:$0xff]  ;;  %v776_v54 = vld [vmem:[%s1379_s12] sm:$0xff] }
 0x1e2   :  { %v361_v59 = vpop.permute.xlu1 %360  ;;  %v359_v60 = vpop.permute.xlu0 %358 }
 0x1e3   :  { %v368_v61 = vsel %vm366_vm10, %v365_v57, %v361_v59  ;;  %v367_v62 = vsel %vm366_vm10, %v364_v58, %v359_v60  ;;  %v899_v58 = vld [vmem:[%s1378_s11] ss:$0 sm:$0xff]  ;;  %s1043_s11 = smov [#allocation3]  }
 0x1e4   :  { %959 = vmatprep.mubr.msk.f32.mxu1 %vm375_vm11, %v367_v62  ;;  %s875_s12 = sshll.u32 %s1043_s11, 4  ;;  %s876_s12 = int_to_ptr.vmem [resolvable:$true] %s875_s12 }
 0x1e5   :  { %960 = vmatmul.mubr.msk.f32.vlgmr.msra.gmra.mxu1 %vm375_vm11, %v368_v61  ;;  %s1014_s22 = scalar_lea.vmem %s876_s12, 32  ;;  %p1019_p1 = scmp.lt.s32.totalorder %s876_s12, %s876_s12 }
 0x1e6   :  { %981 = vmatprep.mubr.msk.f32.mxu1 %vm1042_vm12, %v1040_v7  ;;  %978 = vmatpush3.msra.mxu1 %v620_v36  ;;  %p1015_p0 = scmp.ne.s32.totalorder %s876_s12, %s1014_s22  ;;  %p1020_p2 = scmp.lt.s32.totalorder %s1014_s22, %s1014_s22 }
 0x1e7   :  { %979 = vmatprep.subr.mxu1 %v1040_v7 }
 0x1e8   :  { %980 = vmatpush3.msra.mxu1 %v619_v37  ;;  %p1021_p3 = por %p1020_p2, %p1019_p1 }
 0x1e9   :  { %984 = vmatprep.subr.mxu1 %v1040_v7 }
 0x1ea   :  { %p1022_p4 = pnand %p1021_p3, %p1015_p0 }
 0x2a5   :  { %v961_v3 = vpop.f32.mrf.mxu1 }
 0x2a6   :  { %v465_v5 = vmul.f32 %v961_v3, %v892_v2 }
 0x2a7   :  { %v448_v6 = vpop.f32.mrf.mxu1 }
 0x2a8   :  { %v474_v8 = vadd.f32 %v893_v4, %v465_v5  ;;  %v464_v9 = vmul.f32 %v892_v2, %v448_v6 }
 0x2aa   :  { %v476_v10 = vmax.f32 %v474_v8, 0.0  ;;  %v473_v11 = vadd.f32 %v893_v4, %v464_v9 }
 0x2ac   :  { %v480_v12 = vrot.slane %v476_v10, 1  ;;  %v475_v13 = vmax.f32 %v473_v11, 0.0 }
 0x2ae   :  { %v482_v14 = vsel %vm80_vm1, %v480_v12, %v1231_v31  ;;  %v479_v15 = vrot.slane %v475_v13, 1 }
 0x2af   :  { %v486_v18 = vmax.f32 %v476_v10, %v482_v14 }
 0x2b0   :  { %v481_v19 = vsel %vm80_vm1, %v479_v15, %v480_v12 }
 0x2b1   :  { %488 = vst.msk [vmem:[#allocation2 + $0x8] sm:$0xff] %vm171_vm7, %v486_v18  ;;  %v485_v20 = vmax.f32 %v475_v13, %v481_v19 }
 0x2b3   :  { %487 = vst.msk [vmem:[#allocation2] sm:$0xff] %vm171_vm7, %v485_v20 }
 0x2ba   :  { %v489_v22 = vld [vmem:[#allocation2] ss:$2 sm:$0xff] }
 0x2bb   :  { %503 = vrot.lane.b32.xlu0 %v489_v22, %s1039_s29  ;;  %v497_v23 = vrot.slane %v489_v22, 1  ;;  %v491_v27 = vrot.slane %v489_v22, 7 }
 0x2bd   :  { %v500_v24 = vsel %vm499_vm13, %v497_v23, 0.0  ;;  %v493_v28 = vsel %vm69_vm0, 0.0, %v491_v27 }
 0x2be   :  { %v501_v25 = vsel %vm192_vm3, %v500_v24, %v497_v23  ;;  %v494_v29 = vsel %vm192_vm3, %v493_v28, 0.0 }
 0x2bf   :  { %v502_v26 = vsel %vm80_vm1, %v501_v25, 0.0  ;;  %v496_v32 = vsel %vm495_vm14, %v494_v29, %v491_v27 }
 0x2c0   :  { %507 = vrot.lane.b32.xlu1 %v502_v26, %s1041_s4 }
 0x32d   :  { %v504_v30 = vpop.permute.xlu0 %503 }
 0x32e   :  { %v510_v33 = vsel %vm171_vm7, %v496_v32, %v504_v30 }
 0x332   :  { %v508_v34 = vpop.permute.xlu1 %507 }
 0x333   :  { %v511_v35 = vsel %vm366_vm10, %v510_v33, %v508_v34 }
 0x334   :  { %975 = vmatmul.mubr.msk.f32.vlgmr.msra.gmra.mxu0 %vm375_vm11, %v511_v35 }
 0x335   :  { %999 = vmatprep.mubr.msk.f32.mxu0 %vm1042_vm12, %v1040_v7  ;;  %992 = vmatpush3.msra.mxu0 %v779_v51 }
 0x336   :  { %993 = vmatprep.subr.mxu0 %v1040_v7 }
 0x337   :  { %994 = vmatpush3.msra.mxu0 %v778_v52 }
 0x338   :  { %995 = vmatprep.subr.mxu0 %v1040_v7 }
 0x339   :  { %996 = vmatpush3.msra.mxu0 %v777_v53 }
 0x33a   :  { %997 = vmatprep.subr.mxu0 %v1040_v7 }
 0x33b   :  { %998 = vmatpush3.msra.mxu0 %v776_v54 }
 0x3f4   :  { %v587_v39 = vpop.f32.mrf.mxu0 }
 0x3f5   :  { %v598_v41 = vmul.f32 %v895_v38, %v587_v39 }
 0x3f6   :  { %v976_v42 = vpop.f32.mrf.mxu0 }
 0x3f7   :  { %v606_v43 = vadd.f32 %v896_v40, %v598_v41 }
 0x3f9   :  { %v607_v44 = vmax.f32 %v606_v43, 0.0 }
 0x3fb   :  { %v609_v45 = vrot.slane %v607_v44, 1 }
 0x3fd   :  { %v610_v46 = vsel %vm80_vm1, %v609_v45, %v1231_v31 }
 0x3fe   :  { %v612_v47 = vmax.f32 %v607_v44, %v610_v46 }
 0x400   :  { %613 = vst.msk [vmem:[#allocation2] sm:$0xff] %vm171_vm7, %v612_v47 }
 0x407   :  { %v618_v49 = vld [vmem:[#allocation2 + $0x2] ss:$4 sm:$0x3]  ;;  %v614_v31 = vld [vmem:[#allocation2] ss:$4 sm:$0x3] }
 0x408   :  { %982 = vmatmul.mubr.msk.f32.vlgmr.msra.gmra.mxu1 %vm171_vm7, %v618_v49 }
 0x409   :  { %985 = vmatpush3.msra.mxu1 %v616_v48  ;;  %988 = vmatprep.mubr.msk.f32.mxu1 %vm1042_vm12, %v1040_v7 }
 0x40a   :  { %986 = vmatprep.subr.mxu1 %v1040_v7  ;;  %v900_v7 = vld [vmem:[%s1380_s13] ss:$0 sm:$0xff] }
 0x40b   :  { %987 = vmatpush3.msra.mxu1 %v615_v50 }
 0x40c   :  { %989 = vmatmul.mubr.msk.f32.vlgmr.msra.gmra.mxu1 %vm171_vm7, %v614_v31 }
 0x4c8   :  { %v690_v55 = vpop.f32.mrf.mxu1 }
 0x4ca   :  { %v983_v56 = vpop.f32.mrf.mxu1 }
 0x4cc   :  { %v763_v57 = vpop.f32.mrf.mxu1 }
 0x4cd   :  { %v764_v59 = vadd.f32 %v763_v57, %v690_v55 }
 0x4ce   :  { %v990_v60 = vpop.f32.mrf.mxu1 }
 0x4cf   :  { %v774_v61 = vadd.f32 %v899_v58, %v764_v59 }
 0x4d1   :  { %v775_v62 = vmax.f32 %v774_v61, 0.0 }
 0x4d3   :  { %1000 = vmatmul.mubr.msk.f32.vlgmr.msra.gmra.mxu0 %vm366_vm10, %v775_v62 }
 0x593   :  { %v856_v63 = vpop.f32.mrf.mxu0 }
 0x594   :  { %v857_v0 = vadd.f32 %v900_v7, %v856_v63 }
 0x595   :  { %v1001_v1 = vpop.f32.mrf.mxu0 }
 0x596   :  { %v860_v2 = vmax.f32 %v857_v0, 0.0 }
 0x598   :  { %v861_v3 = vsub.f32 0.0, %v860_v2 }
 0x59a   :  { %v862_v4 = vmul.f32 1.442695, %v861_v3 }
 0x59c   :  { %1010 = vpow2.f32 %v862_v4 }
 0x5a9   :  { %v1011_v5 = vpop.eup %1010 }
 0x5aa   :  { %v864_v6 = vadd.f32 1.0, %v1011_v5 }
 0x5ac   :  { %1012 = vrcp.f32 %v864_v6 }
 0x5b9   :  { %v1013_v8 = vpop.eup %1012 }
 0x5ba   :  { %868 = vst.msk [vmem:[#allocation3] sm:$0x3] %vm867_vm15, %v1013_v8 }
 0x5bb   :  { %1025 = shalt.err (!%p1022_p4)
}
 0x5bc   :  { %878 = dma.vmem_to_hbm [thread:$0]  %s876_s12, 32, %s1381_s14, [#allocation4]  }
 0x5bd   :  { %1034 = dma.done.wait [#allocation4], 32  }
 0x5be   :  { %1035 = vsyncadd [#allocation4], 4294967264 }
 0x5bf   :  { %882 = vsyncpa [#allocation4], 1 }

</bundles_post_ra>
